<compile_context>
chip_gen: v5e
topology: v5e:2x2
jax: 0.10.0
libtpu: 0.0.40
codegen_flags: <defaults>
</compile_context>

<pallas_src>
import functools

import jax
import jax.numpy as jnp
from jax import lax
from jax.experimental import pallas as pl
from jax.experimental.pallas import tpu as pltpu


def _pick_tile(n, cap, mult):
    """Largest tile <= cap that divides n (multiple of `mult`), else n (full)."""
    if n <= cap:
        return n
    for t in range(cap, mult - 1, -mult):
        if n % t == 0:
            return t
    return n


# ----------------------------------------------------------------------------
# Fused edge-conv kernel, one grid step per (batch, query-point tile):
#   knn (f32) -> per-neighbor one-hot gather matmul (bf16 hi/lo) -> folded BN
#   -> LeakyReLU(0.2) -> running max over k neighbors.
# ----------------------------------------------------------------------------
def _edgeconv_kernel(q_ref, xt_ref, xsq_ref, xdh_ref, xdl_ref, wq_ref, bias_ref,
                     o_ref, *, k):
    Q = q_ref[0]                                # (TQ, C)   query tile
    xt = xt_ref[0]                              # (C, N)    pre-transposed point set
    xsq = xsq_ref[0]                            # (1, N)    ||x_j||^2 (precomputed)
    xd_hi = xdh_ref[0]                          # (N, Cout) bf16 hi half of X @ (wd*s)
    xd_lo = xdl_ref[0]                          # (N, Cout) bf16 residual (lo half)
    tq = Q.shape[0]
    n = xt.shape[1]
    c_out = xd_hi.shape[1]

    # ---- knn scores (f32 so neighbor selection stays tight to the reference).
    # The per-row constant -||q_i||^2 is dropped: it cannot change the per-row
    # argmax and dropping it saves a second matmul per layer.
    inner = jnp.dot(Q, xt, preferred_element_type=jnp.float32)      # (TQ, N)
    pw0 = 2.0 * inner - xsq

    # ---- centre-point contribution of the reassociated conv (BN scale folded
    # into the weights in the wrapper): base = q @ ((wc - wd)*s) + (beta - mu*s)
    base = jnp.dot(Q, wq_ref[...], preferred_element_type=jnp.float32) + bias_ref[...]

    col = lax.broadcasted_iota(jnp.int32, (tq, n), 1)

    def body(_, carry):
        pw, acc = carry
        # argmax pass (first index wins ties, matching lax.top_k's selection set)
        m = jnp.max(pw, axis=-1, keepdims=True)                     # (TQ, 1)
        first = jnp.min(jnp.where(pw >= m, col, n), axis=-1, keepdims=True)
        is_sel = col == first                                       # one-hot per row
        sel = is_sel.astype(jnp.bfloat16)                           # exact 0/1
        # ---- one-hot gather matmul for this neighbor (bf16 MXU, f32 acc).
        # Each row of `sel` has exactly one 1, so hi+lo reconstructs the f32
        # projected feature row essentially exactly.
        g = jnp.dot(sel, xd_hi, preferred_element_type=jnp.float32)  # (TQ, Cout)
        g = g + jnp.dot(sel, xd_lo, preferred_element_type=jnp.float32)
        y = g + base                                                # conv + folded BN
        y = jnp.where(y >= 0, y, 0.2 * y)                           # LeakyReLU(0.2)
        acc = jnp.maximum(acc, y)                                   # max over neighbors
        pw = jnp.where(is_sel, jnp.float32(-jnp.inf), pw)           # mask selected
        return pw, acc

    acc0 = jnp.full((tq, c_out), -jnp.inf, jnp.float32)
    _, acc = lax.fori_loop(0, k, body, (pw0, acc0))
    o_ref[0] = acc


def edge_conv_block(x, w, scale, bias, *, k):
    """x: (B, N, C);  w: (2C, Cout);  scale/bias: (1, Cout)  ->  (B, N, Cout)."""
    B, N, C = x.shape
    c_out = w.shape[1]
    w_diff, w_cent = w[:C], w[C:]

    # Fold the BatchNorm scale into the conv weights (wrapper-side, once):
    #   y*s + b = neigh @ (wd*s) + q @ ((wc - wd)*s) + b
    wd_s = w_diff * scale                       # (C, Cout)
    wq_s = (w_cent - w_diff) * scale            # (C, Cout)

    # Hoisted per-batch projection of every point (one XLA matmul per layer
    # instead of one per query tile), stored as a bf16 hi/lo pair so the
    # in-kernel gather matmuls use the bf16 MXU path at ~f32 accuracy.
    xd = jnp.einsum("bnc,cd->bnd", x, wd_s, precision=lax.Precision.HIGHEST)
    xd_hi = xd.astype(jnp.bfloat16)
    xd_lo = (xd - xd_hi.astype(jnp.float32)).astype(jnp.bfloat16)

    xt = jnp.swapaxes(x, 1, 2)                  # (B, C, N): pre-transposed for knn
    xsq = jnp.sum(x * x, axis=-1)[:, None, :]   # (B, 1, N): row norms

    tq = _pick_tile(N, 128, 8)                  # query-point tile
    kern = functools.partial(_edgeconv_kernel, k=k)
    return pl.pallas_call(
        kern,
        out_shape=jax.ShapeDtypeStruct((B, N, c_out), jnp.float32),
        grid=(B, N // tq),
        in_specs=[
            pl.BlockSpec((1, tq, C), lambda b, q: (b, q, 0)),       # query tile
            pl.BlockSpec((1, C, N), lambda b, q: (b, 0, 0)),        # x^T (resident per b)
            pl.BlockSpec((1, 1, N), lambda b, q: (b, 0, 0)),        # row norms
            pl.BlockSpec((1, N, c_out), lambda b, q: (b, 0, 0)),    # X@(wd*s) hi (bf16)
            pl.BlockSpec((1, N, c_out), lambda b, q: (b, 0, 0)),    # X@(wd*s) lo (bf16)
            # Constant block index -> weights / BN params stay VMEM-resident.
            pl.BlockSpec((C, c_out), lambda b, q: (0, 0)),          # (wc-wd)*s
            pl.BlockSpec((1, c_out), lambda b, q: (0, 0)),          # folded BN bias
        ],
        out_specs=pl.BlockSpec((1, tq, c_out), lambda b, q: (b, q, 0)),
        compiler_params=pltpu.CompilerParams(
            dimension_semantics=("parallel", "parallel"),   # both axes independent
            # Only (TQ, N)/(TQ, Cout) temporaries are live now; ~10-15 MB worst
            # case at N=2048, C=Cout=256 -> 32 MiB leaves ample headroom even
            # on v7x's 64 MiB per-TC VMEM.
            vmem_limit_bytes=32 * 1024 * 1024),
    )(x, xt, xsq, xd_hi, xd_lo, wq_s, bias)


# ----------------------------------------------------------------------------
# MLP head kernel: fc1 tiled over its contraction dim (accumulator in VMEM
# scratch), fc2 -> ReLU -> fc3 fused into the last grid step.
# ----------------------------------------------------------------------------
def _mlp_kernel(x_ref, w1_ref, b1_ref, w2_ref, b2_ref, w3_ref, b3_ref,
                o_ref, acc_ref):
    step = pl.program_id(0)

    @pl.when(step == 0)
    def _():
        acc_ref[...] = jnp.zeros_like(acc_ref)

    # fc1 partial product: bf16 operands (weights stored bf16), f32 accumulate.
    acc_ref[...] += lax.dot_general(
        x_ref[...].astype(jnp.bfloat16), w1_ref[...],
        (((1,), (0,)), ((), ())), preferred_element_type=jnp.float32)

    @pl.when(step == pl.num_programs(0) - 1)
    def _():
        h = jnp.maximum(acc_ref[...] + b1_ref[...], 0.0)
        h = jnp.maximum(
            jnp.dot(h, w2_ref[...], preferred_element_type=jnp.float32) + b2_ref[...],
            0.0)
        o_ref[...] = jnp.dot(h, w3_ref[...], preferred_element_type=jnp.float32) + b3_ref[...]


def mlp_head(xf, w1, b1, w2, b2, w3, b3):
    """xf: (B, K);  w1: (K, H) bf16;  w2: (H, H);  w3: (H, n_out)."""
    B, K = xf.shape
    H = w1.shape[1]
    n_out = w3.shape[1]
    # fc1 is an HBM-bound weight stream: use a big contraction tile so per-step
    # overhead (~0.35 us) is amortized.  (8192, 512) bf16 double-buffered is
    # 16 MB -> explicit vmem limit below.
    tk = _pick_tile(K, 8192, 128)
    # TODO(synk): per-target weight-only compression of w1 (fp8 on v7x, int8 on
    # v5e/v6e) would halve the dominant HBM stream; kept bf16 here for accuracy.
    return pl.pallas_call(
        _mlp_kernel,
        out_shape=jax.ShapeDtypeStruct((B, n_out), jnp.float32),
        grid=(K // tk,),
        in_specs=[
            pl.BlockSpec((B, tk), lambda s: (0, s)),
            pl.BlockSpec((tk, H), lambda s: (s, 0)),
            pl.BlockSpec((1, H), lambda s: (0, 0)),
            pl.BlockSpec((H, H), lambda s: (0, 0)),
            pl.BlockSpec((1, H), lambda s: (0, 0)),
            pl.BlockSpec((H, n_out), lambda s: (0, 0)),
            pl.BlockSpec((1, n_out), lambda s: (0, 0)),
        ],
        out_specs=pl.BlockSpec((B, n_out), lambda s: (0, 0)),
        scratch_shapes=[pltpu.VMEM((B, H), jnp.float32)],
        compiler_params=pltpu.CompilerParams(
            dimension_semantics=("arbitrary",),    # reduction axis
            vmem_limit_bytes=40 * 1024 * 1024),
    )(xf, w1, b1, w2, b2, w3, b3)


# ----------------------------------------------------------------------------
# Full forward
# ----------------------------------------------------------------------------
def dgcnn_forward(x, p, *, k):
    h = edge_conv_block(x, p["w1"], p["s1"], p["o1"], k=k)   # (B, N, 64)
    h = edge_conv_block(h, p["w2"], p["s2"], p["o2"], k=k)   # (B, N, 64)
    h = edge_conv_block(h, p["w3"], p["s3"], p["o3"], k=k)   # (B, N, 128)
    h = edge_conv_block(h, p["w4"], p["s4"], p["o4"], k=k)   # (B, N, 256)
    B, N, C = h.shape
    # No runtime (B,N,C)->(B,C,N) transpose: fc1's rows were permuted at init
    # so the natural (B, N*C) flatten matches PyTorch's c*N+n flatten order.
    flat = h.reshape(B, N * C)
    return mlp_head(flat, p["fw1_nc"], p["fb1"], p["fw2"], p["fb2"],
                    p["fw3"], p["fb3"])


# ----------------------------------------------------------------------------
# Deterministic parameter initialization (synthetic; mirrors module shapes)
# ----------------------------------------------------------------------------
def init_params(key, num_points):
    ks = jax.random.split(key, 11)

    def conv_w(kk, cin, cout):
        return jax.random.normal(kk, (cin, cout), jnp.float32) * (2.0 / cin) ** 0.5

    def bn(kk, c):
        k1, k2, k3, k4 = jax.random.split(kk, 4)
        gamma = 1.0 + 0.1 * jax.random.normal(k1, (1, c), jnp.float32)
        beta = 0.1 * jax.random.normal(k2, (1, c), jnp.float32)
        mean = 0.1 * jax.random.normal(k3, (1, c), jnp.float32)
        var = 1.0 + 0.2 * jax.random.uniform(k4, (1, c), jnp.float32)
        scale = gamma * lax.rsqrt(var + 1e-5)       # fold BatchNorm2d (eval mode)
        return scale, beta - mean * scale

    def fc(kk, cin, cout):
        k1, k2 = jax.random.split(kk)
        lim = 1.0 / (cin ** 0.5)
        w = jax.random.uniform(k1, (cin, cout), jnp.float32, -lim, lim)
        b = jax.random.uniform(k2, (1, cout), jnp.float32, -lim, lim)
        return w, b

    p = {}
    p["w1"] = conv_w(ks[0], 6, 64);     p["s1"], p["o1"] = bn(ks[1], 64)
    p["w2"] = conv_w(ks[2], 128, 64);   p["s2"], p["o2"] = bn(ks[3], 64)
    p["w3"] = conv_w(ks[4], 128, 128);  p["s3"], p["o3"] = bn(ks[5], 128)
    p["w4"] = conv_w(ks[6], 256, 256);  p["s4"], p["o4"] = bn(ks[7], 256)
    p["fw1"], p["fb1"] = fc(ks[8], num_points * 256, 512)
    # Offline layout plumbing: permute fc1 rows from PyTorch's c*N+n flatten
    # order to the kernel's n*C+c order, and store them in bf16 (fc1 is
    # HBM-bandwidth-bound on its num_points*256 x 512 weight).
    p["fw1_nc"] = (p["fw1"].reshape(256, num_points, 512)
                   .transpose(1, 0, 2).reshape(num_points * 256, 512)
                   .astype(jnp.bfloat16))
    p["fw2"], p["fb2"] = fc(ks[9], 512, 512)
    p["fw3"], p["fb3"] = fc(ks[10], 512, 2)
    return p


# ----------------------------------------------------------------------------
# Pure-JAX f32 reference (mirrors the PyTorch module) for a sanity check
# ----------------------------------------------------------------------------
def _ref_edge_conv(feat, w, scale, bias, k):
    B, N, C = feat.shape
    inner = -2.0 * jnp.einsum("bnc,bmc->bnm", feat, feat)
    xx = jnp.sum(feat ** 2, axis=-1)
    pd = -xx[:, :, None] - inner - xx[:, None, :]
    idx = lax.top_k(pd, k)[1]                                   # (B, N, k)
    neigh = jax.vmap(lambda f, i: f[i])(feat, idx)              # (B, N, k, C)
    cent = jnp.broadcast_to(feat[:, :, None, :], (B, N, k, C))
    edge = jnp.concatenate([neigh - cent, cent], axis=-1)       # (B, N, k, 2C)
    y = jnp.einsum("bnkc,cd->bnkd", edge, w) * scale + bias
    y = jnp.where(y >= 0, y, 0.2 * y)
    return jnp.max(y, axis=2)


def dgcnn_ref(x, p, k):
    h = _ref_edge_conv(x, p["w1"], p["s1"], p["o1"], k)
    h = _ref_edge_conv(h, p["w2"], p["s2"], p["o2"], k)
    h = _ref_edge_conv(h, p["w3"], p["s3"], p["o3"], k)
    h = _ref_edge_conv(h, p["w4"], p["s4"], p["o4"], k)
    B, N, C = h.shape
    flat = jnp.transpose(h, (0, 2, 1)).reshape(B, C * N)        # PyTorch c*N+n flatten
    h1 = jnp.maximum(flat @ p["fw1"] + p["fb1"], 0.0)
    h2 = jnp.maximum(h1 @ p["fw2"] + p["fb2"], 0.0)
    return h2 @ p["fw3"] + p["fb3"]


if __name__ == "__main__":
    B, N, KNN = 2, 16, 4                     # batch, num_points, k (small test shapes)
    key = jax.random.PRNGKey(0)
    kx, kp = jax.random.split(key)
    x = jax.random.normal(kx, (B, N, 3), jnp.float32)   # module input: (B, num_points, 3)
    params = init_params(kp, N)

    out = jax.block_until_ready(dgcnn_forward(x, params, k=KNN))
    assert out.shape == (B, 2)

    ref = dgcnn_ref(x, params, KNN)
    # Edge convs / knn run at f32 accuracy (one-hot gather uses an exact bf16
    # hi/lo split); only fc1 uses bf16 weights/activations (f32 accumulation),
    # so 2e-2 is generous.
    if not bool(jnp.allclose(out, ref, atol=2e-2, rtol=2e-2)):
        raise AssertionError(
            "mismatch vs reference, max abs err "
            f"{float(jnp.max(jnp.abs(out - ref)))}")
    print("KERNEL_OK")
</pallas_src>

<mosaic_0001>
module attributes {stable_mosaic.version = 11 : i64} {
  func.func @_edgeconv_kernel(%arg0: i32, %arg1: i32, %arg2: memref<1x16x3xf32, #tpu.memory_space<vmem>>, %arg3: memref<1x3x16xf32, #tpu.memory_space<vmem>>, %arg4: memref<1x1x16xf32, #tpu.memory_space<vmem>>, %arg5: memref<1x16x64xbf16, #tpu.memory_space<vmem>>, %arg6: memref<1x16x64xbf16, #tpu.memory_space<vmem>>, %arg7: memref<3x64xf32, #tpu.memory_space<vmem>>, %arg8: memref<1x64xf32, #tpu.memory_space<vmem>>, %arg9: memref<1x16x64xf32, #tpu.memory_space<vmem>>) attributes {dimension_semantics = [#tpu.dimension_semantics<parallel>, #tpu.dimension_semantics<parallel>], iteration_bounds = array<i64: 2, 1>, scalar_prefetch = 0 : i64, scratch_operands = 0 : i64, tpu.core_type = #tpu.core_type<tc>, window_params = [{transform_indices = @transform_0, window_bounds = array<i64: 1, 16, 3>}, {transform_indices = @transform_1, window_bounds = array<i64: 1, 3, 16>}, {transform_indices = @transform_2, window_bounds = array<i64: 1, 1, 16>}, {transform_indices = @transform_3, window_bounds = array<i64: 1, 16, 64>}, {transform_indices = @transform_4, window_bounds = array<i64: 1, 16, 64>}, {pipeline_mode = #tpu.pipeline_mode<synchronous>, transform_indices = @transform_5, window_bounds = array<i64: 3, 64>}, {pipeline_mode = #tpu.pipeline_mode<synchronous>, transform_indices = @transform_6, window_bounds = array<i64: 1, 64>}, {transform_indices = @transform_7, window_bounds = array<i64: 1, 16, 64>}]} {
    %c0 = arith.constant 0 : index
    %c0_0 = arith.constant 0 : index
    %c0_1 = arith.constant 0 : index
    %0 = vector.load %arg2[%c0, %c0_0, %c0_1] : memref<1x16x3xf32, #tpu.memory_space<vmem>>, vector<1x16x3xf32>
    %1 = vector.shape_cast %0 : vector<1x16x3xf32> to vector<16x3xf32>
    %c0_2 = arith.constant 0 : index
    %c0_3 = arith.constant 0 : index
    %c0_4 = arith.constant 0 : index
    %2 = vector.load %arg3[%c0_2, %c0_3, %c0_4] : memref<1x3x16xf32, #tpu.memory_space<vmem>>, vector<1x3x16xf32>
    %3 = vector.shape_cast %2 : vector<1x3x16xf32> to vector<3x16xf32>
    %c0_5 = arith.constant 0 : index
    %c0_6 = arith.constant 0 : index
    %c0_7 = arith.constant 0 : index
    %4 = vector.load %arg4[%c0_5, %c0_6, %c0_7] : memref<1x1x16xf32, #tpu.memory_space<vmem>>, vector<1x1x16xf32>
    %5 = vector.shape_cast %4 : vector<1x1x16xf32> to vector<1x16xf32>
    %c0_8 = arith.constant 0 : index
    %c0_9 = arith.constant 0 : index
    %c0_10 = arith.constant 0 : index
    %6 = vector.load %arg5[%c0_8, %c0_9, %c0_10] : memref<1x16x64xbf16, #tpu.memory_space<vmem>>, vector<1x16x64xbf16>
    %7 = vector.shape_cast %6 : vector<1x16x64xbf16> to vector<16x64xbf16>
    %c0_11 = arith.constant 0 : index
    %c0_12 = arith.constant 0 : index
    %c0_13 = arith.constant 0 : index
    %8 = vector.load %arg6[%c0_11, %c0_12, %c0_13] : memref<1x16x64xbf16, #tpu.memory_space<vmem>>, vector<1x16x64xbf16>
    %9 = vector.shape_cast %8 : vector<1x16x64xbf16> to vector<16x64xbf16>
    %cst = arith.constant dense<0.000000e+00> : vector<16x16xf32>
    %10 = tpu.matmul %1, %3, %cst {dimension_numbers = #tpu.dot_dimension_numbers<[1], [0], [0], [1], [0, 0, 1, 1], [], []>} : vector<16x3xf32>, vector<3x16xf32>, vector<16x16xf32> -> vector<16x16xf32>
    %cst_14 = arith.constant 2.000000e+00 : f32
    %11 = vector.broadcast %cst_14 : f32 to vector<16x16xf32>
    %12 = arith.mulf %11, %10 : vector<16x16xf32>
    %13 = vector.broadcast %5 : vector<1x16xf32> to vector<16x16xf32>
    %14 = arith.subf %12, %13 : vector<16x16xf32>
    %c0_15 = arith.constant 0 : index
    %c0_16 = arith.constant 0 : index
    %15 = vector.load %arg7[%c0_15, %c0_16] : memref<3x64xf32, #tpu.memory_space<vmem>>, vector<3x64xf32>
    %cst_17 = arith.constant dense<0.000000e+00> : vector<16x64xf32>
    %16 = tpu.matmul %1, %15, %cst_17 {dimension_numbers = #tpu.dot_dimension_numbers<[1], [0], [0], [1], [0, 0, 1, 1], [], []>} : vector<16x3xf32>, vector<3x64xf32>, vector<16x64xf32> -> vector<16x64xf32>
    %c0_18 = arith.constant 0 : index
    %c0_19 = arith.constant 0 : index
    %17 = vector.load %arg8[%c0_18, %c0_19] : memref<1x64xf32, #tpu.memory_space<vmem>>, vector<1x64xf32>
    %18 = vector.broadcast %17 : vector<1x64xf32> to vector<16x64xf32>
    %19 = arith.addf %16, %18 : vector<16x64xf32>
    %20 = tpu.iota {dimensions = array<i32: 1>} : vector<16x16xi32>
    %cst_20 = arith.constant 0xFF800000 : f32
    %21 = vector.broadcast %cst_20 : f32 to vector<16x64xf32>
    %c0_i32 = arith.constant 0 : i32
    %c4_i32 = arith.constant 4 : i32
    %22 = arith.addi %c0_i32, %c4_i32 : i32
    %c1_i32 = arith.constant 1 : i32
    %23:2 = scf.for %arg10 = %c0_i32 to %22 step %c1_i32 iter_args(%arg11 = %14, %arg12 = %21) -> (vector<16x16xf32>, vector<16x64xf32>)  : i32 {
      %cst_24 = arith.constant dense<0xFF800000> : vector<16xf32>
      %27 = vector.multi_reduction <maximumf>, %arg11, %cst_24 [1] : vector<16x16xf32> to vector<16xf32>
      %28 = vector.shape_cast %27 : vector<16xf32> to vector<16x1xf32>
      %29 = vector.broadcast %28 : vector<16x1xf32> to vector<16x16xf32>
      %30 = arith.cmpf oge, %arg11, %29 : vector<16x16xf32>
      %c16_i32 = arith.constant 16 : i32
      %31 = vector.broadcast %c16_i32 : i32 to vector<16x16xi32>
      %32 = arith.select %30, %20, %31 : vector<16x16xi1>, vector<16x16xi32>
      %cst_25 = arith.constant dense<2147483647> : vector<16xi32>
      %33 = vector.multi_reduction <minsi>, %32, %cst_25 [1] : vector<16x16xi32> to vector<16xi32>
      %34 = vector.shape_cast %33 : vector<16xi32> to vector<16x1xi32>
      %35 = vector.broadcast %34 : vector<16x1xi32> to vector<16x16xi32>
      %36 = arith.cmpi eq, %20, %35 : vector<16x16xi32>
      %37 = arith.extui %36 : vector<16x16xi1> to vector<16x16xi32>
      %38 = arith.sitofp %37 : vector<16x16xi32> to vector<16x16xf32>
      %39 = arith.truncf %38 : vector<16x16xf32> to vector<16x16xbf16>
      %cst_26 = arith.constant dense<0.000000e+00> : vector<16x64xf32>
      %40 = tpu.matmul %39, %7, %cst_26 {dimension_numbers = #tpu.dot_dimension_numbers<[1], [0], [0], [1], [0, 0, 1, 1], [], []>} : vector<16x16xbf16>, vector<16x64xbf16>, vector<16x64xf32> -> vector<16x64xf32>
      %cst_27 = arith.constant dense<0.000000e+00> : vector<16x64xf32>
      %41 = tpu.matmul %39, %9, %cst_27 {dimension_numbers = #tpu.dot_dimension_numbers<[1], [0], [0], [1], [0, 0, 1, 1], [], []>} : vector<16x16xbf16>, vector<16x64xbf16>, vector<16x64xf32> -> vector<16x64xf32>
      %42 = arith.addf %40, %41 : vector<16x64xf32>
      %43 = arith.addf %42, %19 : vector<16x64xf32>
      %cst_28 = arith.constant 0.000000e+00 : f32
      %44 = vector.broadcast %cst_28 : f32 to vector<16x64xf32>
      %45 = arith.cmpf oge, %43, %44 : vector<16x64xf32>
      %cst_29 = arith.constant 2.000000e-01 : f32
      %46 = vector.broadcast %cst_29 : f32 to vector<16x64xf32>
      %47 = arith.mulf %46, %43 : vector<16x64xf32>
      %48 = arith.select %45, %43, %47 : vector<16x64xi1>, vector<16x64xf32>
      %49 = arith.maximumf %arg12, %48 : vector<16x64xf32>
      %cst_30 = arith.constant 0xFF800000 : f32
      %50 = vector.broadcast %cst_30 : f32 to vector<16x16xf32>
      %51 = arith.select %36, %50, %arg11 : vector<16x16xi1>, vector<16x16xf32>
      scf.yield %51, %49 : vector<16x16xf32>, vector<16x64xf32>
    }
    %c0_21 = arith.constant 0 : index
    %c0_22 = arith.constant 0 : index
    %c0_23 = arith.constant 0 : index
    %24 = vector.load %arg9[%c0_21, %c0_22, %c0_23] : memref<1x16x64xf32, #tpu.memory_space<vmem>>, vector<1x16x64xf32>
    %25 = vector.shape_cast %24 : vector<1x16x64xf32> to vector<16x64xf32>
    %26 = vector.shape_cast %23#1 : vector<16x64xf32> to vector<1x16x64xf32>
    tpu.vector_store %arg9[%c0_21, %c0_22, %c0_23], %26 {strides = array<i32>} : memref<1x16x64xf32, #tpu.memory_space<vmem>>, vector<1x16x64xf32>,
    return
  }
  func.func @transform_0(%arg0: i32, %arg1: i32) -> (i32, i32, i32) {
    %c0_i32 = arith.constant 0 : i32
    %c0_i32_0 = arith.constant 0 : i32
    return %arg0, %arg1, %c0_i32 : i32, i32, i32
  }
  func.func @transform_1(%arg0: i32, %arg1: i32) -> (i32, i32, i32) {
    %c0_i32 = arith.constant 0 : i32
    %c0_i32_0 = arith.constant 0 : i32
    %c0_i32_1 = arith.constant 0 : i32
    return %arg0, %c0_i32, %c0_i32_0 : i32, i32, i32
  }
  func.func @transform_2(%arg0: i32, %arg1: i32) -> (i32, i32, i32) {
    %c0_i32 = arith.constant 0 : i32
    %c0_i32_0 = arith.constant 0 : i32
    %c0_i32_1 = arith.constant 0 : i32
    return %arg0, %c0_i32, %c0_i32_0 : i32, i32, i32
  }
  func.func @transform_3(%arg0: i32, %arg1: i32) -> (i32, i32, i32) {
    %c0_i32 = arith.constant 0 : i32
    %c0_i32_0 = arith.constant 0 : i32
    %c0_i32_1 = arith.constant 0 : i32
    return %arg0, %c0_i32, %c0_i32_0 : i32, i32, i32
  }
  func.func @transform_4(%arg0: i32, %arg1: i32) -> (i32, i32, i32) {
    %c0_i32 = arith.constant 0 : i32
    %c0_i32_0 = arith.constant 0 : i32
    %c0_i32_1 = arith.constant 0 : i32
    return %arg0, %c0_i32, %c0_i32_0 : i32, i32, i32
  }
  func.func @transform_5(%arg0: i32, %arg1: i32) -> (i32, i32) {
    %c0_i32 = arith.constant 0 : i32
    %c0_i32_0 = arith.constant 0 : i32
    %c0_i32_1 = arith.constant 0 : i32
    return %c0_i32, %c0_i32_0 : i32, i32
  }
  func.func @transform_6(%arg0: i32, %arg1: i32) -> (i32, i32) {
    %c0_i32 = arith.constant 0 : i32
    %c0_i32_0 = arith.constant 0 : i32
    %c0_i32_1 = arith.constant 0 : i32
    return %c0_i32, %c0_i32_0 : i32, i32
  }
  func.func @transform_7(%arg0: i32, %arg1: i32) -> (i32, i32, i32) {
    %c0_i32 = arith.constant 0 : i32
    %c0_i32_0 = arith.constant 0 : i32
    return %arg0, %arg1, %c0_i32 : i32, i32, i32
  }
}

</mosaic_0001>

<bundles_post_ra>
// kernel: tpu_custom_call.1
= control target key start
LH: loop header
LB: loop body
LE: loop exit
PB: predicated region body
PF: predicated region fallthrough
CT: control target
= control target key end

     0   :  { %s1239_s0 = inlined_call_operand.vmem [shape: f32[2,16,3], index: 0, kind: input, shape index: {}]   ;;  %s1240_s1 = inlined_call_operand.vmem [shape: f32[2,3,16], index: 1, kind: input, shape index: {}]   ;;  %s1241_s2 = inlined_call_operand.vmem [shape: f32[2,1,16], index: 2, kind: input, shape index: {}]   ;;  %s1242_s3 = inlined_call_operand.vmem [shape: bf16[2,16,64], index: 3, kind: input, shape index: {}]   ;;  %s1243_s4 = inlined_call_operand.vmem [shape: bf16[2,16,64], index: 4, kind: input, shape index: {}]   ;;  %s1244_s5 = inlined_call_operand.vmem [shape: f32[3,64], index: 5, kind: input, shape index: {}]   ;;  %s1245_s6 = inlined_call_operand.vmem [shape: f32[1,64], index: 6, kind: input, shape index: {}]   ;;  %s1246_s7 = inlined_call_operand.hbm [shape: f32[2,16,64], index: 7, kind: output, shape index: {}]  }
   0x1   :  { %1247 = sst [smem:[#allocation5_spill]] %s1244_s5 }
   0x2   :  { %12 = vsyncpa [#allocation3], 0 }
   0x3   :  { %14 = vsyncpa [#allocation3 + $0x1], 0  ;;  %s1044_s24 = smov 0   ;;  %s1046_s25 = smov 0  }
   0x4   :  { %s1048_s26 = smov 0   ;;  %s1050_s27 = smov 0  }
   0x5   :  { %s1052_s28 = smov 0   ;;  %s1054_s29 = smov 0  }
   0x6 LB: > { %s737_s30 = sadd.s32 4294967295, %s979_s29   ;;  %s738_s8 = sadd.s32 4294967294, %s979_s29   ;;  %s979_s29 = sphi %s1054_s29, %s20_s29   ;;  %s975_s28 = sphi %s1052_s28, %s1257_s28   ;;  %s971_s27 = sphi %s1050_s27, %s1256_s27   ;;  %s967_s26 = sphi %s1048_s26, %s1255_s26   ;;  %s963_s25 = sphi %s1046_s25, %s1254_s25   ;;  %s959_s24 = sphi %s1044_s24, %s1253_s24  }
   0x7   : > { %s32_s9 = sadd.s32 1, %s975_s28  ;;  %s215_s10 = sadd.s32 1, %s967_s26 }
   0x8   : > { %p34_p0 = scmp.ge.s32.totalorder %s32_s9, 2  ;;  %p225_p1 = scmp.ne.s32.totalorder %s967_s26, %s963_s25 }
   0x9   : > { %p226_p2 = scmp.eq.s32.totalorder %s737_s30, 1  ;;  %p231_p3 = scmp.ne.s32.totalorder %s963_s25, %s959_s24 }
   0xa   : > { %s1259_s9 = smov (%p34_p0, %s32_s9), 0  ;;  %p232_p5 = scmp.eq.s32.totalorder %s738_s8, 1 }
   0xb   : > { %p1084_p4 = por %p226_p2, %p225_p1  ;;  %s210_s12 = ssub.s32 %s975_s28, %s1259_s9 }
   0xc   : > { %p741_p6 = scmp.ge.s32.totalorder %s979_s29, 1  ;;  %p213_p7 = scmp.eq.s32.totalorder %s210_s12, 0 }
   0xd   : > { %p1091_p8 = por %p232_p5, %p231_p3  ;;  %p298_p9 = scmp.lt.s32.totalorder %s979_s29, 3 }
   0xe   : > { %s1097_s14 = scalar_select %p213_p7, %s967_s26, %s215_s10  }
   0xf   : > { %p299_p10 = pnand %p741_p6, %p298_p9 }
  0x10   : > { %p352_p11 = scmp.lt.s32.totalorder (!%p299_p10), %s971_s27, 1  ;;  %s1250_s5 = sld [smem:[#allocation5_spill]] (!%p299_p10) }
  0x11   : > { %302 = sbr.rel (%p299_p10) target bundleno = 686 (0x2ae), region = 48  ;;  %s348_s17 = sand.u32 (!%p299_p10), 1, %s963_s25  }
  0x12   : > { %s1107_s18 = sshll.u32 (!%p299_p10), %s348_s17, 4  ;;  %s1156_s15 = smov (!%p299_p10), 0  }
  0x16   : > { %vm395_vm0 = vcmask 1042432   ;;  %v429_v0 = vld [vmem:[%s1250_s5] sm:$0x7]  ;;  %s353_s19 = scalar_select %p352_p11, %s971_s27, 1  ;;  %vm388_vm1 = vcmask 23552   ;;  %v460_v8 = vlaneseq  ;;  %v1148_v22 = vmov -inf  }
  0x17   : > { %780 = vmatpush.msk.msra.mxu3 %vm395_vm0, %v429_v0  ;;  %753 = vmatpush.msk.msra.mxu1 %vm395_vm0, %v429_v0  ;;  %v880_v10 = vld [vmem:[%s1245_s6] ss:$0 sm:$0xff]  ;;  %v1150_v23 = vmov -inf  }
  0x18   : > { %s745_s20 = sshll.u32 %s353_s19, 2  ;;  %s774_s21 = sshll.u32 %s353_s19, 3  ;;  %v1136_v9 = vand.u32 127, %v460_v8 }
  0x19   : > { %s364_s30 = scalar_lea.vmem %s1240_s1, %s745_s20  ;;  %s372_s12 = scalar_lea.vmem %s1242_s3, %s774_s21 }
  0x1a   : > { %s377_s5 = scalar_lea.vmem %s1243_s4, %s774_s21  ;;  %v382_v1 = vld [vmem:[%s364_s30] sm:$0x7]  ;;  %v1122_v3 = vld [vmem:[%s372_s12] sm:$0xf0]  ;;  %s773_s20 = sshll.u32 %s353_s19, 4 }
  0x1b   : > { %v1120_v2 = vld [vmem:[%s372_s12] sm:$0xf]  ;;  %v1126_v5 = vld [vmem:[%s377_s5] sm:$0xf0]  ;;  %779 = vmatpush.msk.msra.mxu2 %vm395_vm0, %v382_v1  ;;  %750 = vmatpush.msk.msra.mxu0 %vm395_vm0, %v382_v1  ;;  %s367_s8 = scalar_lea.vmem %s1241_s2, %s353_s19  ;;  %s359_s10 = scalar_lea.vmem %s1239_s0, %s773_s20 }
  0x1c   : > { %v1124_v4 = vld [vmem:[%s377_s5] sm:$0xf]  ;;  %v381_v6 = vld [vmem:[%s359_s10 + $0x8] sm:$0xff]  ;;  %s1146_s19 = scalar_lea.vmem [#allocation2], %s1107_s18 }
  0x1d   : > { %v380_v7 = vld [vmem:[%s359_s10] sm:$0xff]  ;;  %752 = vmatmul.msk.f32.vlgmr.msra.gmra.mxu2 %vm388_vm1, %v381_v6  ;;  %755 = vmatmul.msk.f32.vlgmr.msra.gmra.mxu3 %vm388_vm1, %v381_v6 }
  0x1e   : > { %751 = vmatmul.msk.f32.vlgmr.msra.gmra.mxu0 %vm388_vm1, %v380_v7  ;;  %754 = vmatmul.msk.f32.vlgmr.msra.gmra.mxu1 %vm388_vm1, %v380_v7  ;;  %v879_v11 = vld [vmem:[%s367_s8] ss:$0 sm:$0xff] }
  0x9b   : > { %v416_v12 = vpop.f32.mrf.mxu0  ;;  %v454_v13 = vpop.f32.mrf.mxu1 }
  0x9c   : > { %v422_v14 = vmul.f32 2.0, %v416_v12  ;;  %v1141_v15 = vadd.f32 %v880_v10, %v454_v13 }
  0x9e   : > { %v427_v16 = vsub.f32 %v422_v14, %v879_v11  }
  0xa0   : > { %v419_v17 = vpop.f32.mrf.mxu2  ;;  %v457_v18 = vpop.f32.mrf.mxu3 }
  0xa1   : > { %v423_v19 = vmul.f32 2.0, %v419_v17  ;;  %v1143_v20 = vadd.f32 %v880_v10, %v457_v18 }
  0xa3   : > { %v428_v21 = vsub.f32 %v423_v19, %v879_v11  }
  0xa4 LB: >> { %vm472_vm2 = vcmask 130048   ;;  %v761_v44 = vor.u32 %v1126_v5, %v1124_v4  ;;  %v766_v45 = vor.u32 %v1122_v3, %v1120_v2  ;;  %v1001_v56 = vmov 0.0   ;;  %s467_s15 = sadd.s32 1, %s999_s15   ;;  %s999_s15 = sphi %s1156_s15, %s467_s15   ;;  %v995_v16 = vphi %v427_v16, %v573_v16   ;;  %v991_v21 = vphi %v428_v21, %v574_v21   ;;  %v987_v23 = vphi %v1150_v23, %v1252_v23   ;;  %v983_v22 = vphi %v1148_v22, %v1251_v22  }
  0xa5   : >> { %v473_v24 = vsel %vm472_vm2, %v995_v16, -inf  ;;  %v476_v25 = vsel %vm472_vm2, %v991_v21, -inf  ;;  %p464_p12 = scmp.ge.s32.totalorder %s467_s15, 4  }
  0xa6   : >> { %474 = vmax.xlane.f32.xlu0 %v473_v24  ;;  %536 = vmatpush.bf16.msra.mxu0 %v761_v44  ;;  %vm575_vm11 = vcmask (%p464_p12), 523264   ;;  %s778_s18 = sshll.u32 (%p464_p12), %s971_s27, 4  ;;  %s593_s23 = sshll.u32 (%p464_p12), %s1146_s19, 4  ;;  %s594_s23 = int_to_ptr.vmem [resolvable:$true] %s593_s23 }
  0xa7   : >> { %556 = vmatpush.bf16.msra.mxu1 %v766_v45  ;;  %s592_s22 = scalar_lea.hbm (%p464_p12), %s1246_s7, %s778_s18  ;;  %s579_s21 = scalar_lea.sflag (%p464_p12), [#allocation3], %s348_s17 }
  0xa8   : > { %s595_s8 = sshll.u32 (%p464_p12), %s592_s22, 4  ;;  %s901_s12 = scalar_lea.hbm (%p464_p12), %s1246_s7, 32  ;;  %s596_s8 = int_to_ptr.hbm [resolvable:$true] %s595_s8 }
  0xa9   : > { %s895_s30 = sshra.s32 (%p464_p12), %s596_s8, 4  ;;  %s896_s30 = int_to_ptr.hbm [resolvable:$true] %s895_s30 }
  0xaa   : > { %s897_s10 = scalar_lea.hbm (%p464_p12), %s896_s30, 16  ;;  %p902_p2 = scmp.lt.s32.totalorder (%p464_p12), %s896_s30, %s1246_s7 }
  0xab   : > { %p898_p13 = scmp.ne.s32.totalorder (%p464_p12), %s896_s30, %s897_s10  ;;  %p903_p3 = scmp.lt.s32.totalorder (%p464_p12), %s901_s12, %s897_s10 }
  0xad   : > { %p899_p0 = pnand (%p464_p12), %p898_p13, %p1084_p4  ;;  %p904_p5 = por (%p464_p12), %p903_p3, %p902_p2 }
  0xae   : >> { %477 = vmax.xlane.f32.xlu0 %v476_v25 }
  0xaf   : > { %p900_p1 = pneg (%p464_p12), %p899_p0 }
  0xb1   : > { %p905_p6 = pnand (%p464_p12), %p904_p5, %p900_p1 }
 0x119   : >> { %v475_v26 = vpop.xlane.xlu0 %474 }
 0x11a   : >> { %vm479_vm3 = vcmp.ge.f32.partialorder %v995_v16, %v475_v26 }
 0x11b   : >> { %v481_v27 = vsel %vm479_vm3, %v1136_v9, 16 }
 0x11c   : >> { %v483_v28 = vsel %vm472_vm2, %v481_v27, 2147483647 }
 0x11d   : >> { %v485_v29 = vshra.s32 %v483_v28, 16  ;;  %v484_v36 = vand.u32 65535, %v483_v28 }
 0x11f   : >> { %v487_v30 = vcvt.s32.f32 %v485_v29  ;;  %v486_v38 = vcvt.s32.f32 %v484_v36 }
 0x121   : >> { %488 = vmin.xlane.f32.xlu1 %v487_v30  ;;  %v478_v31 = vpop.xlane.xlu0 %477 }
 0x122   : >> { %vm480_vm4 = vcmp.ge.f32.partialorder %v991_v21, %v478_v31 }
 0x123   : >> { %v482_v32 = vsel %vm480_vm4, %v1136_v9, 16 }
 0x124   : >> { %v498_v33 = vsel %vm472_vm2, %v482_v32, 2147483647 }
 0x125   : >> { %v500_v34 = vshra.s32 %v498_v33, 16  ;;  %v499_v40 = vand.u32 65535, %v498_v33 }
 0x127   : >> { %v502_v35 = vcvt.s32.f32 %v500_v34  ;;  %v501_v42 = vcvt.s32.f32 %v499_v40 }
 0x129   : >> { %503 = vmin.xlane.f32.xlu1 %v502_v35 }
 0x194   : >> { %v489_v37 = vpop.xlane.xlu1 %488 }
 0x195   : >> { %vm490_vm5 = vcmp.eq.f32.partialorder %v487_v30, %v489_v37  ;;  %v495_v46 = vcvt.f32.s32 %v489_v37 }
 0x196   : >> { %v491_v39 = vsel %vm490_vm5, %v486_v38, inf }
 0x197   : >> { %492 = vmin.xlane.f32.xlu2 %v491_v39  ;;  %v496_v48 = vshll.u32 %v495_v46, 16 }
 0x19c   : >> { %v504_v41 = vpop.xlane.xlu1 %503 }
 0x19d   : >> { %vm505_vm6 = vcmp.eq.f32.partialorder %v502_v35, %v504_v41  ;;  %v510_v51 = vcvt.f32.s32 %v504_v41 }
 0x19e   : >> { %v506_v43 = vsel %vm505_vm6, %v501_v42, inf }
 0x19f   : >> { %507 = vmin.xlane.f32.xlu2 %v506_v43  ;;  %v511_v53 = vshll.u32 %v510_v51, 16 }
 0x20a   : >> { %v493_v47 = vpop.xlane.xlu2 %492 }
 0x20b   : >> { %v494_v49 = vcvt.f32.s32 %v493_v47 }
 0x20d   : >> { %v497_v50 = vadd.s32 %v496_v48, %v494_v49 }
 0x20f   : >> { %vm513_vm7 = vcmp.eq.s32.totalorder %v1136_v9, %v497_v50 }
 0x210   : >> { %v573_v16 = vsel %vm513_vm7, -inf, %v995_v16   ;;  %v756_v57 = vsel %vm513_vm7, 1.0, %v1001_v56 }
 0x212   : >> { %v508_v52 = vpop.xlane.xlu2 %507 }
 0x213   : >> { %v509_v54 = vcvt.f32.s32 %v508_v52 }
 0x215   : >> { %v512_v55 = vadd.s32 %v511_v53, %v509_v54 }
 0x217   : >> { %vm514_vm8 = vcmp.eq.s32.totalorder %v1136_v9, %v512_v55 }
 0x218   : >> { %v757_v58 = vsel %vm514_vm8, 1.0, %v1001_v56  ;;  %v574_v21 = vsel %vm514_vm8, -inf, %v991_v21  }
 0x219   : >> { %v519_v59 = vpack.c.bf16 %v757_v58, %v756_v57 }
 0x21b   : >> { %762 = vmatmul.msk.bf16.vlgmr.msra.gmra.mxu0 %vm472_vm2, %v519_v59  ;;  %767 = vmatmul.msk.bf16.vlgmr.msra.gmra.mxu1 %vm472_vm2, %v519_v59 }
 0x298   : >> { %v538_v60 = vpop.f32.mrf.mxu0  ;;  %v558_v61 = vpop.f32.mrf.mxu1 }
 0x299   : >> { %v559_v62 = vadd.f32 %v558_v61, %v538_v60 }
 0x29b   : >> { %v563_v63 = vadd.f32 %v559_v62, %v1141_v15 }
 0x29d   : >> { %vm565_vm9 = vcmp.ge.f32.partialorder %v563_v63, 0.0  ;;  %v567_v0 = vmul.f32 0.2, %v563_v63 }
 0x29f   : >> { %v569_v1 = vsel %vm565_vm9, %v563_v63, %v567_v0 }
 0x2a0   : >> { %v571_v6 = vmax.f32 %v987_v23, %v569_v1   ;;  %v540_v7 = vpop.f32.mrf.mxu0  ;;  %v560_v8 = vpop.f32.mrf.mxu1 }
 0x2a1   : >> { %v561_v10 = vadd.f32 %v560_v8, %v540_v7 }
 0x2a2   : >> { %v1252_v23 = vmov %v571_v6  ;;  %576 = vst.msk [vmem:[%s1146_s19] sm:$0xff] (%p464_p12), %vm575_vm11, %v571_v6 }
 0x2a3   : >> { %v564_v11 = vadd.f32 %v561_v10, %v1143_v20 }
 0x2a5   : >> { %vm566_vm10 = vcmp.ge.f32.partialorder %v564_v11, 0.0  ;;  %v568_v12 = vmul.f32 0.2, %v564_v11 }
 0x2a6   : > { %466 = sbr.rel (!%p464_p12) target bundleno = 164 (0xa4), region = 102 }
 0x2a7   : >> { %v570_v13 = vsel %vm566_vm10, %v564_v11, %v568_v12 }
 0x2a8   : >> { %v572_v14 = vmax.f32 %v983_v22, %v570_v13  }
 0x2aa   : >> { %v1251_v22 = vmov %v572_v14  ;;  %577 = vst.msk [vmem:[%s1146_s19 + $0x8] sm:$0xff] (%p464_p12), %vm575_vm11, %v572_v14 }
 0x2ab   : > { %908 = shalt.err (!%p905_p6)
}
 0x2ac   : > { %s1002_s17 = smov 128   ;;  %s1003_s19 = smov 8  }
 0x2ad   : > { %781 = dma.vmem_to_hbm [thread:$0]  (%p1084_p4), %s594_s23, 256, %s596_s8, %s579_s21, %s1002_s17, %s1002_s17, %s1003_s19  }
 0x2ae PF: > { %p787_p7 = scmp.ge.s32.totalorder %s979_s29, 2  ;;  %s610_s16 = sand.u32 1, %s959_s24  }
 0x2af   : > { %s611_s20 = scalar_lea.sflag [#allocation3], %s610_s16 }
 0x2b0   : > { %p784_p9 = pnand %p787_p7, %p1091_p8 }
 0x2b2   : > { %p785_p10 = pneg %p784_p9 }
 0x2b4   : > { %954 = dma.done.wait (%p785_p10), %s611_s20, 256  }
 0x2b5   : > { %956 = vsyncadd (%p785_p10), %s611_s20, 4294967040  ;;  %s20_s29 = sadd.s32 1, %s979_s29   ;;  %s1253_s24 = smov %s963_s25 }
 0x2b6   : > { %p17_p11 = scmp.ge.s32.totalorder %s20_s29, 4   ;;  %s1254_s25 = smov %s967_s26 }
 0x2b7   : > { %s1255_s26 = smov %s1097_s14  ;;  %s1256_s27 = smov %s975_s28 }
 0x2b8   : > { %s1257_s28 = smov %s1259_s9  ;;  %19 = sbr.rel (!%p17_p11) target bundleno = 6 (0x6), region = 113 }
 0x2bd   :  { %617 = vsyncpa [#allocation3], 1 }
 0x2be   :  { %619 = vsyncpa [#allocation3 + $0x1], 1 }

</bundles_post_ra>
